<compile_context>
chip_gen: v5e
topology: v5e:2x2
jax: 0.10.0
libtpu: 0.0.40
codegen_flags: <defaults>
</compile_context>

<pallas_src>
import numpy as np
import jax
import jax.numpy as jnp
from jax.experimental import pallas as pl
from jax.experimental.pallas import tpu as pltpu

_LANE = 128
_TARGET_BLOCK_BYTES = 2 << 20   # ~2 MiB per block: many pipelined grid steps,
                                # well under VMEM limits on v5e/v6e/v7x.


def _sublane_multiple(dtype):
    """Dtype-aware minimum sublane multiple (sub-32-bit dtypes pack along sublanes)."""
    itemsize = jnp.dtype(dtype).itemsize
    return max(8, (4 // itemsize) * 8)          # f32 -> 8, bf16 -> 16, int8/fp8 -> 32


def _tiled_view(x):
    """Contiguous (padded if ragged) reshape to a lane-dense (rows, 128) slab plus
    a block-row count sized for ~2 MiB blocks on a many-step parallel grid."""
    total = int(x.size)
    itemsize = jnp.dtype(x.dtype).itemsize
    sub = _sublane_multiple(x.dtype)

    rows_needed = -(-total // _LANE)                                   # ceil
    # Block rows: aim for ~2 MiB, aligned to the dtype's sublane multiple.
    br = max(sub, (_TARGET_BLOCK_BYTES // (_LANE * itemsize)) // sub * sub)
    # Never larger than the (sublane-aligned) tensor itself.
    br = min(br, -(-rows_needed // sub) * sub)
    # Pad rows to a whole number of blocks -> unmasked full-lane stores everywhere.
    rows = -(-rows_needed // br) * br
    padded_total = rows * _LANE

    flat = x.reshape(-1)
    if padded_total != total:
        flat = jnp.pad(flat, (0, padded_total - total))
    return flat.reshape(rows, _LANE), total, br, rows // br


# --------------------- backward kernel: dL/dx = -coeff * dL/dy -------------------
def _neg_scale_kernel(c_ref, g_ref, o_ref):
    # GradientReverseFunction.backward: grad_output.neg() * coeff.
    # Multiply in f32 (coeff stays f32) and cast the product, so low-precision
    # gradients still follow the exact f32 warm-start schedule.
    o_ref[...] = (g_ref[...].astype(jnp.float32) * (-c_ref[0])).astype(o_ref.dtype)


def _neg_scale_pallas(g, coeff):
    g2, total, br, nsteps = _tiled_view(g)
    coeff_arr = jnp.asarray(coeff, jnp.float32).reshape((1,))
    out = pl.pallas_call(
        _neg_scale_kernel,
        out_shape=jax.ShapeDtypeStruct(g2.shape, g.dtype),
        grid_spec=pltpu.PrefetchScalarGridSpec(
            num_scalar_prefetch=1,          # coeff lands in SMEM; no retrace on change
            grid=(nsteps,),
            in_specs=[pl.BlockSpec((br, _LANE), lambda i, c: (i, 0))],
            out_specs=pl.BlockSpec((br, _LANE), lambda i, c: (i, 0)),
        ),
        compiler_params=pltpu.CompilerParams(
            dimension_semantics=("parallel",)),
        # TODO(synk): add input_output_aliases={1: 0} when the caller can donate g.
    )(coeff_arr, g2)
    return out.reshape(-1)[:total].reshape(g.shape)


# ------------------------------- custom VJP glue ---------------------------------
@jax.custom_vjp
def gradient_reverse(x, coeff):
    # Forward is an exact identity (input * 1.0).  Per the performance review, no
    # Pallas kernel here: an identity pallas_call is a pure HBM round trip.
    del coeff
    return x


def _grl_fwd(x, coeff):
    return x, coeff


def _grl_bwd(coeff, g):
    # NOTE: kept as a Pallas kernel per the port requirement; in production one
    # could also return -coeff * g as plain jnp and let XLA fuse it upstream.
    # coeff receives no gradient (PyTorch returns None); zeros is equivalent.
    return (_neg_scale_pallas(g, coeff), jnp.zeros_like(coeff))


gradient_reverse.defvjp(_grl_fwd, _grl_bwd)


class WarmStartGradientReverseLayer:
    """JAX/Pallas port of the PyTorch module (forward semantics preserved)."""

    def __init__(self, alpha=1.0, lo=0.0, hi=1.0, max_iters=1000.0,
                 auto_step=False):
        self.alpha = alpha
        self.lo = lo
        self.hi = hi
        self.iter_num = 0
        self.max_iters = max_iters
        self.auto_step = auto_step

    def coeff(self):
        # Exact same scalar schedule as the PyTorch forward (host-side numpy).
        return np.float64(
            2.0 * (self.hi - self.lo)
            / (1.0 + np.exp(-self.alpha * self.iter_num / self.max_iters))
            - (self.hi - self.lo) + self.lo)

    def __call__(self, x):
        coeff = jnp.asarray(self.coeff(), jnp.float32)
        if self.auto_step:
            self.step()
        return gradient_reverse(x, coeff)

    def step(self):
        # TODO(synk): iter_num / auto_step bookkeeping is host-side Python state
        # (as in the PyTorch module), not tracked inside the kernel.
        self.iter_num += 1


# ------------------------------------ main ---------------------------------------
if __name__ == "__main__":
    key = jax.random.PRNGKey(0)
    # 2*4*16*16 = 2048 elements -> lane-dense (16, 128) slab, single full block.
    x = jax.random.normal(key, (2, 4, 16, 16), jnp.float32)

    layer = WarmStartGradientReverseLayer(alpha=1.0, lo=0.0, hi=1.0,
                                          max_iters=1000.0, auto_step=True)
    # Advance the warm-start schedule so coeff != 0 for the backward check.
    for _ in range(250):
        layer.step()
    coeff_np = float(layer.coeff())
    coeff = jnp.asarray(coeff_np, jnp.float32)

    # Forward: exact identity (x * 1.0), no kernel launched.
    out = jax.block_until_ready(layer(x))
    np.testing.assert_allclose(np.asarray(out), np.asarray(x), rtol=0, atol=0)

    # Run the Pallas backward kernel directly once and block on it.
    direct = jax.block_until_ready(_neg_scale_pallas(jnp.ones_like(x), coeff))
    np.testing.assert_allclose(np.asarray(direct),
                               np.full(x.shape, -coeff_np, np.float32),
                               rtol=1e-6, atol=1e-6)

    # Backward through the custom VJP: d/dx sum(GRL(x)) == -coeff everywhere.
    g = jax.block_until_ready(
        jax.grad(lambda z: jnp.sum(gradient_reverse(z, coeff)))(x))
    np.testing.assert_allclose(np.asarray(g),
                               np.full(x.shape, -coeff_np, np.float32),
                               rtol=1e-6, atol=1e-6)

    # Ragged-size path (105 elements -> padded to an (8, 128) tile, sliced back).
    x_rag = jax.random.normal(jax.random.PRNGKey(1), (3, 5, 7), jnp.float32)
    g_rag = jax.block_until_ready(_neg_scale_pallas(jnp.ones_like(x_rag), coeff))
    np.testing.assert_allclose(np.asarray(g_rag),
                               np.full(x_rag.shape, -coeff_np, np.float32),
                               rtol=1e-6, atol=1e-6)

    print("KERNEL_OK")
</pallas_src>

<mosaic_0001>
module attributes {stable_mosaic.version = 11 : i64} {
  func.func @_neg_scale_kernel(%arg0: i32, %arg1: memref<1xf32, #tpu.memory_space<smem>>, %arg2: memref<16x128xf32, #tpu.memory_space<vmem>>, %arg3: memref<16x128xf32, #tpu.memory_space<vmem>>) attributes {dimension_semantics = [#tpu.dimension_semantics<parallel>], iteration_bounds = array<i64: 1>, scalar_prefetch = 1 : i64, scratch_operands = 0 : i64, tpu.core_type = #tpu.core_type<tc>, window_params = [{transform_indices = @transform_0, window_bounds = array<i64: 16, 128>}, {transform_indices = @transform_1, window_bounds = array<i64: 16, 128>}]} {
    %c0 = arith.constant 0 : index
    %c0_0 = arith.constant 0 : index
    %0 = vector.load %arg2[%c0, %c0_0] : memref<16x128xf32, #tpu.memory_space<vmem>>, vector<16x128xf32>
    %c0_1 = arith.constant 0 : index
    %1 = memref.load %arg1[%c0_1] : memref<1xf32, #tpu.memory_space<smem>>
    %cst = arith.constant 0.000000e+00 : f32
    %2 = arith.subf %cst, %1 : f32
    %3 = vector.broadcast %2 : f32 to vector<16x128xf32>
    %4 = arith.mulf %0, %3 : vector<16x128xf32>
    %c0_2 = arith.constant 0 : index
    %c0_3 = arith.constant 0 : index
    %5 = vector.load %arg3[%c0_2, %c0_3] : memref<16x128xf32, #tpu.memory_space<vmem>>, vector<16x128xf32>
    tpu.vector_store %arg3[%c0_2, %c0_3], %4 {strides = array<i32>} : memref<16x128xf32, #tpu.memory_space<vmem>>, vector<16x128xf32>,
    return
  }
  func.func @transform_0(%arg0: i32, %arg1: memref<1xf32, #tpu.memory_space<smem>>) -> (i32, i32) {
    %c0_i32 = arith.constant 0 : i32
    %c0_i32_0 = arith.constant 0 : i32
    return %arg0, %c0_i32 : i32, i32
  }
  func.func @transform_1(%arg0: i32, %arg1: memref<1xf32, #tpu.memory_space<smem>>) -> (i32, i32) {
    %c0_i32 = arith.constant 0 : i32
    %c0_i32_0 = arith.constant 0 : i32
    return %arg0, %c0_i32 : i32, i32
  }
}

</mosaic_0001>

<bundles_post_ra>
// kernel: tpu_custom_call.1
= control target key start
LH: loop header
LB: loop body
LE: loop exit
PB: predicated region body
PF: predicated region fallthrough
CT: control target
= control target key end

     0   :  { %8 = vsyncpa [#allocation5], 0  ;;  %s139_s0 = inlined_call_operand.<no memory space> [shape: f32[1], index: 0, kind: input, shape index: {}]   ;;  %s140_s1 = inlined_call_operand.hbm [shape: f32[16,128], index: 1, kind: input, shape index: {}]   ;;  %s141_s2 = inlined_call_operand.hbm [shape: f32[16,128], index: 2, kind: output, shape index: {}]  }
   0x1   :  { %9 = vsyncpa [#allocation6], 0  ;;  %s14_s11 = sshll.u32 %s140_s1, 4  ;;  %s111_s12 = smov [#allocation4]   ;;  %s15_s11 = int_to_ptr.hbm [resolvable:$true] %s14_s11 }
   0x2   :  { %s16_s13 = sshll.u32 %s111_s12, 4  ;;  %s112_s14 = smov 128   ;;  %s17_s13 = int_to_ptr.vmem [resolvable:$true] %s16_s13 }
   0x3   :  { %s113_s15 = smov 8  }
   0x4   :  { %22 = dma.hbm_to_vmem [thread:$0]  %s15_s11, 256, %s17_s13, [#allocation5], %s112_s14, %s112_s14, %s113_s15  }
   0x5   :  { %107 = dma.done.wait [#allocation5], 256  }
   0x6   :  { %108 = vsyncadd [#allocation5], 4294967040  ;;  %s30_s18 = ssub.f32 0.0, %s139_s0  ;;  %s114_s19 = smov [#allocation7]   ;;  %v27_v1 = vld [vmem:[#allocation4] sm:$0xff]  ;;  %v28_v2 = vld [vmem:[#allocation4 + $0x8] sm:$0xff] }
   0x7   :  { %s40_s20 = sshll.u32 %s114_s19, 4  ;;  %s42_s1 = sshll.u32 %s141_s2, 4  ;;  %s41_s20 = int_to_ptr.vmem [resolvable:$true] %s40_s20  ;;  %s43_s1 = int_to_ptr.hbm [resolvable:$true] %s42_s1 }
   0x8   :  { %v31_v0 = vstv %s30_s18 }
   0x9   :  { %v32_v3 = vmul.f32 %v31_v0, %v27_v1  ;;  %v33_v4 = vmul.f32 %v31_v0, %v28_v2 }
   0xb   :  { %34 = vst [vmem:[#allocation7] sm:$0xff] %v32_v3 }
   0xc   :  { %35 = vst [vmem:[#allocation7 + $0x8] sm:$0xff] %v33_v4 }
   0xd   :  { %48 = dma.vmem_to_hbm [thread:$0]  %s41_s20, 256, %s43_s1, [#allocation6], %s112_s14, %s112_s14, %s113_s15  }
   0xe   :  { %109 = dma.done.wait [#allocation6], 256  }
   0xf   :  { %110 = vsyncadd [#allocation6], 4294967040 }
  0x10   :  { %53 = vsyncpa [#allocation5], 1 }
  0x11   :  { %54 = vsyncpa [#allocation6], 1 }

</bundles_post_ra>
